<compile_context>
chip_gen: v7x
topology: tpu7x:2x2x1
jax: 0.10.0
libtpu: 0.0.40
codegen_flags: <defaults>
</compile_context>

<pallas_src>
import functools
import math

import jax
import jax.numpy as jnp
from jax import lax
from jax.experimental import pallas as pl
from jax.experimental.pallas import tpu as pltpu

BN_EPS = 1e-5
LANE = 128


def _basic_block_kernel(x_ref, w1_ref, b1_ref, w2_ref, b2_ref, o_ref,
                        xp_scr, y1_scr, *, Nb, H, W, C):
    """Fused conv1+bn1+relu + conv2+bn2+residual+relu for Nb images per step.

    Packed lane layout: last dim = W*C (channel fastest), C padded so that
    W*C % 128 == 0.

    Refs:
      x_ref  : (Nb, H, W*C)    f32  input (also the residual)
      w1_ref : (3, W*C, W*C)   bf16 conv1 banded weights (dx folded, BN1 scale folded)
      b1_ref : (1, W*C)        f32  folded BN1 bias (tiled over W)
      w2_ref : (3, W*C, W*C)   bf16 conv2 banded weights (BN2 scale folded)
      b2_ref : (1, W*C)        f32  folded BN2 bias
      o_ref  : (Nb, H, W*C)    f32  output
    Scratch (VMEM):
      xp_scr : (Nb, H+2, W*C)  bf16 row-halo-padded input plane
      y1_scr : (Nb, H+2, W*C)  bf16 row-halo-padded intermediate (never hits HBM)
    """
    WC = W * C

    # Zero only the 1-row top/bottom halos, every step (2 tiny stores/plane).
    # The dx halo is folded into the banded weights, so there is no column
    # halo and the interior stores below are lane-aligned & full-width.
    zrow = jnp.zeros((Nb, 1, WC), xp_scr.dtype)
    xp_scr[:, 0:1, :] = zrow
    xp_scr[:, H + 1:H + 2, :] = zrow
    y1_scr[:, 0:1, :] = zrow
    y1_scr[:, H + 1:H + 2, :] = zrow

    x = x_ref[...].astype(jnp.float32)                    # (Nb, H, WC) residual (f32)
    xp_scr[:, 1:H + 1, :] = x.astype(xp_scr.dtype)        # bf16 matmul operand

    def conv3x3(src_scr, w_ref):
        # dx taps are folded into the banded weight, so a 3x3 conv is just
        # 3 lane-aligned (Nb*H, WC) @ (WC, WC) bf16 matmuls with f32 accum.
        # TODO(synk): on v7x, accumulate in the MRB (or concatenate the 3 dy
        # slices along K into one matmul) instead of VPU adds.
        acc = jnp.zeros((Nb * H, WC), jnp.float32)
        for dy in range(3):
            rows = src_scr[:, dy:dy + H, :].reshape(Nb * H, WC)
            acc = acc + jnp.dot(rows, w_ref[dy],
                                preferred_element_type=jnp.float32)
        return acc

    # conv1 + folded BN1 + ReLU; intermediate stays in VMEM (bf16, with halo).
    y1 = jnp.maximum(conv3x3(xp_scr, w1_ref) + b1_ref[...], 0.0)
    y1_scr[:, 1:H + 1, :] = y1.reshape(Nb, H, WC).astype(y1_scr.dtype)

    # conv2 + folded BN2 + residual + ReLU (f32 epilogue).
    out = conv3x3(y1_scr, w2_ref) + b2_ref[...] + x.reshape(Nb * H, WC)
    o_ref[...] = jnp.maximum(out, 0.0).reshape(Nb, H, WC).astype(o_ref.dtype)


def _fold_bn(gamma, beta, mean, var):
    scale = gamma / jnp.sqrt(var + BN_EPS)
    return scale, beta - mean * scale


def _banded_weights(w_oihw, W):
    """(Cout, Cin, 3, 3) -> (3, W*Cin, W*Cout).

    The 3 dx taps of each dy row are folded into one band matrix over the
    packed W*C lane axis.  Taps that would read the left/right zero padding
    are dropped (they multiply zeros), so no column halo is needed.
    """
    cout, cin = w_oihw.shape[0], w_oihw.shape[1]
    w9 = jnp.transpose(w_oihw, (2, 3, 1, 0))            # [dy, dx, Cin, Cout]
    bands = []
    for dy in range(3):
        band = jnp.zeros((W, cin, W, cout), w_oihw.dtype)
        for dx in range(3):
            # physical x-column p feeds output column q when p == q + dx - 1
            sel = jnp.eye(W, W, k=1 - dx, dtype=w_oihw.dtype)   # sel[p, q]
            band = band + sel[:, None, :, None] * w9[dy, dx][None, :, None, :]
        bands.append(band.reshape(W * cin, W * cout))
    return jnp.stack(bands, 0)


def basic_block_forward(x_nchw, params):
    """Pallas implementation of BasicBlock.forward (stride=1, downsample=None)."""
    n, cin, h, w = x_nchw.shape
    cmid = params["w1"].shape[0]
    cout = params["w2"].shape[0]
    assert cin == cmid == cout, "stride=1 / downsample=None requires inplanes == planes"

    # Pad channels so the packed lane width W*C is a multiple of 128
    # (lane-dense stores + full MXU lanes).  Padded channels carry zero
    # weights / zero data and are sliced off at the end.
    q = LANE // math.gcd(LANE, w)
    cp = ((cin + q - 1) // q) * q
    pad = cp - cin

    def pad_w(wgt):
        return jnp.pad(wgt, ((0, pad), (0, pad), (0, 0), (0, 0)))

    def pad_c(vec, cval=0.0):
        return jnp.pad(vec, (0, pad), constant_values=cval)

    # Fold BN (inference form) into conv weights + bias.
    s1, b1 = _fold_bn(pad_c(params["g1"], 1.0), pad_c(params["b1"]),
                      pad_c(params["m1"]), pad_c(params["v1"], 1.0))
    s2, b2 = _fold_bn(pad_c(params["g2"], 1.0), pad_c(params["b2"]),
                      pad_c(params["m2"]), pad_c(params["v2"], 1.0))
    w1f = pad_w(params["w1"]) * s1[:, None, None, None]
    w2f = pad_w(params["w2"]) * s2[:, None, None, None]

    # bf16 MXU operands (f32 accumulation + f32 bias/ReLU/residual epilogue).
    w1_bd = _banded_weights(w1f, w).astype(jnp.bfloat16)        # (3, W*Cp, W*Cp)
    w2_bd = _banded_weights(w2f, w).astype(jnp.bfloat16)
    b1_t = jnp.tile(b1, w)[None, :].astype(jnp.float32)         # (1, W*Cp)
    b2_t = jnp.tile(b2, w)[None, :].astype(jnp.float32)

    # NCHW -> packed (N, H, W*Cp), channel fastest on lanes.
    x_nhwc = jnp.transpose(x_nchw, (0, 2, 3, 1))
    x_nhwc = jnp.pad(x_nhwc, ((0, 0), (0, 0), (0, 0), (0, pad)))
    x_packed = x_nhwc.reshape(n, h, w * cp)

    # Block several images per grid step: pushes matmul M toward 128/256 and
    # amortizes the per-step pipeline overhead.
    nb = 1
    for cand in range(1, min(n, 8) + 1):
        if n % cand == 0:
            nb = cand

    wc = w * cp
    kernel = functools.partial(_basic_block_kernel, Nb=nb, H=h, W=w, C=cp)

    out_packed = pl.pallas_call(
        kernel,
        out_shape=jax.ShapeDtypeStruct((n, h, wc), x_nchw.dtype),
        grid=(n // nb,),
        in_specs=[
            pl.BlockSpec((nb, h, wc), lambda i: (i, 0, 0)),
            pl.BlockSpec((3, wc, wc), lambda i: (0, 0, 0)),   # grid-invariant
            pl.BlockSpec((1, wc), lambda i: (0, 0)),
            pl.BlockSpec((3, wc, wc), lambda i: (0, 0, 0)),
            pl.BlockSpec((1, wc), lambda i: (0, 0)),
        ],
        out_specs=pl.BlockSpec((nb, h, wc), lambda i: (i, 0, 0)),
        scratch_shapes=[
            pltpu.VMEM((nb, h + 2, wc), jnp.bfloat16),
            pltpu.VMEM((nb, h + 2, wc), jnp.bfloat16),
        ],
        compiler_params=pltpu.CompilerParams(
            dimension_semantics=("parallel",)),
    )(x_packed, w1_bd, b1_t, w2_bd, b2_t)

    # packed (N, H, W*Cp) -> NCHW (drop channel padding).
    out = out_packed.reshape(n, h, w, cp)[..., :cout]
    return jnp.transpose(out, (0, 3, 1, 2))


# ----------------------------- pure-JAX reference ---------------------------
def _reference_forward(x, p):
    def conv(z, wgt):
        return lax.conv_general_dilated(
            z, wgt, window_strides=(1, 1), padding=((1, 1), (1, 1)),
            dimension_numbers=("NCHW", "OIHW", "NCHW"))

    def bn(z, g, b, m, v):
        g, b, m, v = (a[None, :, None, None] for a in (g, b, m, v))
        return (z - m) / jnp.sqrt(v + BN_EPS) * g + b

    out = jax.nn.relu(bn(conv(x, p["w1"]), p["g1"], p["b1"], p["m1"], p["v1"]))
    out = bn(conv(out, p["w2"]), p["g2"], p["b2"], p["m2"], p["v2"])
    return jax.nn.relu(out + x)


if __name__ == "__main__":
    N, C, H, W = 2, 4, 16, 16           # inplanes = planes = 4, stride = 1
    key = jax.random.PRNGKey(0)
    ks = jax.random.split(key, 11)

    params = {
        "w1": jax.random.normal(ks[0], (C, C, 3, 3), jnp.float32) * 0.1,
        "w2": jax.random.normal(ks[1], (C, C, 3, 3), jnp.float32) * 0.1,
        "g1": jax.random.normal(ks[2], (C,), jnp.float32) * 0.1 + 1.0,
        "b1": jax.random.normal(ks[3], (C,), jnp.float32) * 0.1,
        "m1": jax.random.normal(ks[4], (C,), jnp.float32) * 0.1,
        "v1": jax.random.uniform(ks[5], (C,), jnp.float32, 0.5, 1.5),
        "g2": jax.random.normal(ks[6], (C,), jnp.float32) * 0.1 + 1.0,
        "b2": jax.random.normal(ks[7], (C,), jnp.float32) * 0.1,
        "m2": jax.random.normal(ks[8], (C,), jnp.float32) * 0.1,
        "v2": jax.random.uniform(ks[9], (C,), jnp.float32, 0.5, 1.5),
    }
    x = jax.random.normal(ks[10], (N, C, H, W), jnp.float32)

    out = basic_block_forward(x, params)
    out = jax.block_until_ready(out)

    ref = _reference_forward(x, params)
    assert out.shape == (N, C, H, W) and out.dtype == jnp.float32
    # bf16 MXU operands -> relaxed tolerance vs the f32 reference.
    assert jnp.allclose(out, ref, atol=3e-2, rtol=3e-2), "mismatch vs reference"

    print("KERNEL_OK")
</pallas_src>

<mosaic_0001>
module attributes {stable_mosaic.version = 11 : i64} {
  func.func @_basic_block_kernel(%arg0: i32, %arg1: memref<2x16x128xf32, #tpu.memory_space<vmem>>, %arg2: memref<3x128x128xbf16, #tpu.memory_space<vmem>>, %arg3: memref<1x128xf32, #tpu.memory_space<vmem>>, %arg4: memref<3x128x128xbf16, #tpu.memory_space<vmem>>, %arg5: memref<1x128xf32, #tpu.memory_space<vmem>>, %arg6: memref<2x16x128xf32, #tpu.memory_space<vmem>>, %arg7: memref<2x18x128xbf16, #tpu.memory_space<vmem>>, %arg8: memref<2x18x128xbf16, #tpu.memory_space<vmem>>) attributes {dimension_semantics = [#tpu.dimension_semantics<parallel>], iteration_bounds = array<i64: 1>, scalar_prefetch = 0 : i64, scratch_operands = 2 : i64, tpu.core_type = #tpu.core_type<tc>, window_params = [{transform_indices = @transform_0, window_bounds = array<i64: 2, 16, 128>}, {pipeline_mode = #tpu.pipeline_mode<synchronous>, transform_indices = @transform_1, window_bounds = array<i64: 3, 128, 128>}, {pipeline_mode = #tpu.pipeline_mode<synchronous>, transform_indices = @transform_2, window_bounds = array<i64: 1, 128>}, {pipeline_mode = #tpu.pipeline_mode<synchronous>, transform_indices = @transform_3, window_bounds = array<i64: 3, 128, 128>}, {pipeline_mode = #tpu.pipeline_mode<synchronous>, transform_indices = @transform_4, window_bounds = array<i64: 1, 128>}, {transform_indices = @transform_5, window_bounds = array<i64: 2, 16, 128>}]} {
    %cst = arith.constant 0.000000e+00 : bf16
    %0 = vector.broadcast %cst : bf16 to vector<2x1x128xbf16>
    %c0 = arith.constant 0 : index
    %c0_0 = arith.constant 0 : index
    %c0_1 = arith.constant 0 : index
    %1 = vector.load %arg7[%c0, %c0_0, %c0_1] : memref<2x18x128xbf16, #tpu.memory_space<vmem>>, vector<2x1x128xbf16>
    tpu.vector_store %arg7[%c0, %c0_0, %c0_1], %0 {strides = array<i32>} : memref<2x18x128xbf16, #tpu.memory_space<vmem>>, vector<2x1x128xbf16>,
    %c0_2 = arith.constant 0 : index
    %c17 = arith.constant 17 : index
    %c0_3 = arith.constant 0 : index
    %2 = vector.load %arg7[%c0_2, %c17, %c0_3] : memref<2x18x128xbf16, #tpu.memory_space<vmem>>, vector<2x1x128xbf16>
    tpu.vector_store %arg7[%c0_2, %c17, %c0_3], %0 {strides = array<i32>} : memref<2x18x128xbf16, #tpu.memory_space<vmem>>, vector<2x1x128xbf16>,
    %c0_4 = arith.constant 0 : index
    %c0_5 = arith.constant 0 : index
    %c0_6 = arith.constant 0 : index
    %3 = vector.load %arg8[%c0_4, %c0_5, %c0_6] : memref<2x18x128xbf16, #tpu.memory_space<vmem>>, vector<2x1x128xbf16>
    tpu.vector_store %arg8[%c0_4, %c0_5, %c0_6], %0 {strides = array<i32>} : memref<2x18x128xbf16, #tpu.memory_space<vmem>>, vector<2x1x128xbf16>,
    %c0_7 = arith.constant 0 : index
    %c17_8 = arith.constant 17 : index
    %c0_9 = arith.constant 0 : index
    %4 = vector.load %arg8[%c0_7, %c17_8, %c0_9] : memref<2x18x128xbf16, #tpu.memory_space<vmem>>, vector<2x1x128xbf16>
    tpu.vector_store %arg8[%c0_7, %c17_8, %c0_9], %0 {strides = array<i32>} : memref<2x18x128xbf16, #tpu.memory_space<vmem>>, vector<2x1x128xbf16>,
    %c0_10 = arith.constant 0 : index
    %c0_11 = arith.constant 0 : index
    %c0_12 = arith.constant 0 : index
    %5 = vector.load %arg1[%c0_10, %c0_11, %c0_12] : memref<2x16x128xf32, #tpu.memory_space<vmem>>, vector<2x16x128xf32>
    %6 = arith.truncf %5 : vector<2x16x128xf32> to vector<2x16x128xbf16>
    %c0_13 = arith.constant 0 : index
    %c1 = arith.constant 1 : index
    %c0_14 = arith.constant 0 : index
    %7 = vector.load %arg7[%c0_13, %c1, %c0_14] : memref<2x18x128xbf16, #tpu.memory_space<vmem>>, vector<2x16x128xbf16>
    tpu.vector_store %arg7[%c0_13, %c1, %c0_14], %6 {strides = array<i32>} : memref<2x18x128xbf16, #tpu.memory_space<vmem>>, vector<2x16x128xbf16>,
    %cst_15 = arith.constant 0.000000e+00 : f32
    %8 = vector.broadcast %cst_15 : f32 to vector<32x128xf32>
    %c0_16 = arith.constant 0 : index
    %c0_17 = arith.constant 0 : index
    %c0_18 = arith.constant 0 : index
    %9 = vector.load %arg7[%c0_16, %c0_17, %c0_18] : memref<2x18x128xbf16, #tpu.memory_space<vmem>>, vector<2x16x128xbf16>
    %10 = vector.shape_cast %9 : vector<2x16x128xbf16> to vector<32x128xbf16>
    %c0_19 = arith.constant 0 : index
    %c0_20 = arith.constant 0 : index
    %c0_21 = arith.constant 0 : index
    %11 = vector.load %arg2[%c0_19, %c0_20, %c0_21] : memref<3x128x128xbf16, #tpu.memory_space<vmem>>, vector<1x128x128xbf16>
    %12 = vector.shape_cast %11 : vector<1x128x128xbf16> to vector<128x128xbf16>
    %cst_22 = arith.constant dense<0.000000e+00> : vector<32x128xf32>
    %13 = tpu.matmul %10, %12, %cst_22 {dimension_numbers = #tpu.dot_dimension_numbers<[1], [0], [0], [1], [0, 0, 1, 1], [], []>} : vector<32x128xbf16>, vector<128x128xbf16>, vector<32x128xf32> -> vector<32x128xf32>
    %14 = arith.addf %8, %13 : vector<32x128xf32>
    %c0_23 = arith.constant 0 : index
    %c1_24 = arith.constant 1 : index
    %c0_25 = arith.constant 0 : index
    %15 = vector.load %arg7[%c0_23, %c1_24, %c0_25] : memref<2x18x128xbf16, #tpu.memory_space<vmem>>, vector<2x16x128xbf16>
    %16 = vector.shape_cast %15 : vector<2x16x128xbf16> to vector<32x128xbf16>
    %c1_26 = arith.constant 1 : index
    %c0_27 = arith.constant 0 : index
    %c0_28 = arith.constant 0 : index
    %17 = vector.load %arg2[%c1_26, %c0_27, %c0_28] : memref<3x128x128xbf16, #tpu.memory_space<vmem>>, vector<1x128x128xbf16>
    %18 = vector.shape_cast %17 : vector<1x128x128xbf16> to vector<128x128xbf16>
    %cst_29 = arith.constant dense<0.000000e+00> : vector<32x128xf32>
    %19 = tpu.matmul %16, %18, %cst_29 {dimension_numbers = #tpu.dot_dimension_numbers<[1], [0], [0], [1], [0, 0, 1, 1], [], []>} : vector<32x128xbf16>, vector<128x128xbf16>, vector<32x128xf32> -> vector<32x128xf32>
    %20 = arith.addf %14, %19 : vector<32x128xf32>
    %c0_30 = arith.constant 0 : index
    %c2 = arith.constant 2 : index
    %c0_31 = arith.constant 0 : index
    %21 = vector.load %arg7[%c0_30, %c2, %c0_31] : memref<2x18x128xbf16, #tpu.memory_space<vmem>>, vector<2x16x128xbf16>
    %22 = vector.shape_cast %21 : vector<2x16x128xbf16> to vector<32x128xbf16>
    %c2_32 = arith.constant 2 : index
    %c0_33 = arith.constant 0 : index
    %c0_34 = arith.constant 0 : index
    %23 = vector.load %arg2[%c2_32, %c0_33, %c0_34] : memref<3x128x128xbf16, #tpu.memory_space<vmem>>, vector<1x128x128xbf16>
    %24 = vector.shape_cast %23 : vector<1x128x128xbf16> to vector<128x128xbf16>
    %cst_35 = arith.constant dense<0.000000e+00> : vector<32x128xf32>
    %25 = tpu.matmul %22, %24, %cst_35 {dimension_numbers = #tpu.dot_dimension_numbers<[1], [0], [0], [1], [0, 0, 1, 1], [], []>} : vector<32x128xbf16>, vector<128x128xbf16>, vector<32x128xf32> -> vector<32x128xf32>
    %26 = arith.addf %20, %25 : vector<32x128xf32>
    %c0_36 = arith.constant 0 : index
    %c0_37 = arith.constant 0 : index
    %27 = vector.load %arg3[%c0_36, %c0_37] : memref<1x128xf32, #tpu.memory_space<vmem>>, vector<1x128xf32>
    %28 = vector.broadcast %27 : vector<1x128xf32> to vector<32x128xf32>
    %29 = arith.addf %26, %28 : vector<32x128xf32>
    %cst_38 = arith.constant 0.000000e+00 : f32
    %30 = vector.broadcast %cst_38 : f32 to vector<32x128xf32>
    %31 = arith.maximumf %29, %30 : vector<32x128xf32>
    %32 = vector.shape_cast %31 : vector<32x128xf32> to vector<2x16x128xf32>
    %33 = arith.truncf %32 : vector<2x16x128xf32> to vector<2x16x128xbf16>
    %c0_39 = arith.constant 0 : index
    %c1_40 = arith.constant 1 : index
    %c0_41 = arith.constant 0 : index
    %34 = vector.load %arg8[%c0_39, %c1_40, %c0_41] : memref<2x18x128xbf16, #tpu.memory_space<vmem>>, vector<2x16x128xbf16>
    tpu.vector_store %arg8[%c0_39, %c1_40, %c0_41], %33 {strides = array<i32>} : memref<2x18x128xbf16, #tpu.memory_space<vmem>>, vector<2x16x128xbf16>,
    %cst_42 = arith.constant 0.000000e+00 : f32
    %35 = vector.broadcast %cst_42 : f32 to vector<32x128xf32>
    %c0_43 = arith.constant 0 : index
    %c0_44 = arith.constant 0 : index
    %c0_45 = arith.constant 0 : index
    %36 = vector.load %arg8[%c0_43, %c0_44, %c0_45] : memref<2x18x128xbf16, #tpu.memory_space<vmem>>, vector<2x16x128xbf16>
    %37 = vector.shape_cast %36 : vector<2x16x128xbf16> to vector<32x128xbf16>
    %c0_46 = arith.constant 0 : index
    %c0_47 = arith.constant 0 : index
    %c0_48 = arith.constant 0 : index
    %38 = vector.load %arg4[%c0_46, %c0_47, %c0_48] : memref<3x128x128xbf16, #tpu.memory_space<vmem>>, vector<1x128x128xbf16>
    %39 = vector.shape_cast %38 : vector<1x128x128xbf16> to vector<128x128xbf16>
    %cst_49 = arith.constant dense<0.000000e+00> : vector<32x128xf32>
    %40 = tpu.matmul %37, %39, %cst_49 {dimension_numbers = #tpu.dot_dimension_numbers<[1], [0], [0], [1], [0, 0, 1, 1], [], []>} : vector<32x128xbf16>, vector<128x128xbf16>, vector<32x128xf32> -> vector<32x128xf32>
    %41 = arith.addf %35, %40 : vector<32x128xf32>
    %c0_50 = arith.constant 0 : index
    %c1_51 = arith.constant 1 : index
    %c0_52 = arith.constant 0 : index
    %42 = vector.load %arg8[%c0_50, %c1_51, %c0_52] : memref<2x18x128xbf16, #tpu.memory_space<vmem>>, vector<2x16x128xbf16>
    %43 = vector.shape_cast %42 : vector<2x16x128xbf16> to vector<32x128xbf16>
    %c1_53 = arith.constant 1 : index
    %c0_54 = arith.constant 0 : index
    %c0_55 = arith.constant 0 : index
    %44 = vector.load %arg4[%c1_53, %c0_54, %c0_55] : memref<3x128x128xbf16, #tpu.memory_space<vmem>>, vector<1x128x128xbf16>
    %45 = vector.shape_cast %44 : vector<1x128x128xbf16> to vector<128x128xbf16>
    %cst_56 = arith.constant dense<0.000000e+00> : vector<32x128xf32>
    %46 = tpu.matmul %43, %45, %cst_56 {dimension_numbers = #tpu.dot_dimension_numbers<[1], [0], [0], [1], [0, 0, 1, 1], [], []>} : vector<32x128xbf16>, vector<128x128xbf16>, vector<32x128xf32> -> vector<32x128xf32>
    %47 = arith.addf %41, %46 : vector<32x128xf32>
    %c0_57 = arith.constant 0 : index
    %c2_58 = arith.constant 2 : index
    %c0_59 = arith.constant 0 : index
    %48 = vector.load %arg8[%c0_57, %c2_58, %c0_59] : memref<2x18x128xbf16, #tpu.memory_space<vmem>>, vector<2x16x128xbf16>
    %49 = vector.shape_cast %48 : vector<2x16x128xbf16> to vector<32x128xbf16>
    %c2_60 = arith.constant 2 : index
    %c0_61 = arith.constant 0 : index
    %c0_62 = arith.constant 0 : index
    %50 = vector.load %arg4[%c2_60, %c0_61, %c0_62] : memref<3x128x128xbf16, #tpu.memory_space<vmem>>, vector<1x128x128xbf16>
    %51 = vector.shape_cast %50 : vector<1x128x128xbf16> to vector<128x128xbf16>
    %cst_63 = arith.constant dense<0.000000e+00> : vector<32x128xf32>
    %52 = tpu.matmul %49, %51, %cst_63 {dimension_numbers = #tpu.dot_dimension_numbers<[1], [0], [0], [1], [0, 0, 1, 1], [], []>} : vector<32x128xbf16>, vector<128x128xbf16>, vector<32x128xf32> -> vector<32x128xf32>
    %53 = arith.addf %47, %52 : vector<32x128xf32>
    %c0_64 = arith.constant 0 : index
    %c0_65 = arith.constant 0 : index
    %54 = vector.load %arg5[%c0_64, %c0_65] : memref<1x128xf32, #tpu.memory_space<vmem>>, vector<1x128xf32>
    %55 = vector.broadcast %54 : vector<1x128xf32> to vector<32x128xf32>
    %56 = arith.addf %53, %55 : vector<32x128xf32>
    %57 = vector.shape_cast %5 : vector<2x16x128xf32> to vector<32x128xf32>
    %58 = arith.addf %56, %57 : vector<32x128xf32>
    %cst_66 = arith.constant 0.000000e+00 : f32
    %59 = vector.broadcast %cst_66 : f32 to vector<32x128xf32>
    %60 = arith.maximumf %58, %59 : vector<32x128xf32>
    %61 = vector.shape_cast %60 : vector<32x128xf32> to vector<2x16x128xf32>
    %c0_67 = arith.constant 0 : index
    %c0_68 = arith.constant 0 : index
    %c0_69 = arith.constant 0 : index
    %62 = vector.load %arg6[%c0_67, %c0_68, %c0_69] : memref<2x16x128xf32, #tpu.memory_space<vmem>>, vector<2x16x128xf32>
    tpu.vector_store %arg6[%c0_67, %c0_68, %c0_69], %61 {strides = array<i32>} : memref<2x16x128xf32, #tpu.memory_space<vmem>>, vector<2x16x128xf32>,
    return
  }
  func.func @transform_0(%arg0: i32) -> (i32, i32, i32) {
    %c0_i32 = arith.constant 0 : i32
    %c0_i32_0 = arith.constant 0 : i32
    %c0_i32_1 = arith.constant 0 : i32
    return %arg0, %c0_i32, %c0_i32_0 : i32, i32, i32
  }
  func.func @transform_1(%arg0: i32) -> (i32, i32, i32) {
    %c0_i32 = arith.constant 0 : i32
    %c0_i32_0 = arith.constant 0 : i32
    %c0_i32_1 = arith.constant 0 : i32
    %c0_i32_2 = arith.constant 0 : i32
    return %c0_i32, %c0_i32_0, %c0_i32_1 : i32, i32, i32
  }
  func.func @transform_2(%arg0: i32) -> (i32, i32) {
    %c0_i32 = arith.constant 0 : i32
    %c0_i32_0 = arith.constant 0 : i32
    %c0_i32_1 = arith.constant 0 : i32
    return %c0_i32, %c0_i32_0 : i32, i32
  }
  func.func @transform_3(%arg0: i32) -> (i32, i32, i32) {
    %c0_i32 = arith.constant 0 : i32
    %c0_i32_0 = arith.constant 0 : i32
    %c0_i32_1 = arith.constant 0 : i32
    %c0_i32_2 = arith.constant 0 : i32
    return %c0_i32, %c0_i32_0, %c0_i32_1 : i32, i32, i32
  }
  func.func @transform_4(%arg0: i32) -> (i32, i32) {
    %c0_i32 = arith.constant 0 : i32
    %c0_i32_0 = arith.constant 0 : i32
    %c0_i32_1 = arith.constant 0 : i32
    return %c0_i32, %c0_i32_0 : i32, i32
  }
  func.func @transform_5(%arg0: i32) -> (i32, i32, i32) {
    %c0_i32 = arith.constant 0 : i32
    %c0_i32_0 = arith.constant 0 : i32
    %c0_i32_1 = arith.constant 0 : i32
    return %arg0, %c0_i32, %c0_i32_0 : i32, i32, i32
  }
}

</mosaic_0001>

<bundles_post_ra>
// kernel: tpu_custom_call.1
= control target key start
LH: loop header
LB: loop body
LE: loop exit
PB: predicated region body
PF: predicated region fallthrough
CT: control target
= control target key end

     0   :  { %10 = vsyncpa [#allocation5], 0  ;;  %s1902_s0 = inlined_call_operand.hbm [shape: f32[2,16,128], index: 0, kind: input, shape index: {}]   ;;  %s1903_s1 = inlined_call_operand.hbm [shape: bf16[3,128,128], index: 1, kind: input, shape index: {}]   ;;  %s1904_s2 = inlined_call_operand.vmem [shape: f32[1,128], index: 2, kind: input, shape index: {}]   ;;  %s1905_s3 = inlined_call_operand.hbm [shape: bf16[3,128,128], index: 3, kind: input, shape index: {}]   ;;  %s1906_s4 = inlined_call_operand.vmem [shape: f32[1,128], index: 4, kind: input, shape index: {}]   ;;  %s1907_s5 = inlined_call_operand.hbm [shape: f32[2,16,128], index: 5, kind: output, shape index: {}]  }
   0x1   :  { %11 = vsyncpa [#allocation8], 0 }
   0x2   :  { %12 = vsyncpa [#allocation6], 0  ;;  %s1620_s18 = smov [#allocation7]   ;;  %s1526_s22 = scalar_lea.hbm %s1903_s1, 3072 }
   0x3   :  { %s30_s19 = sshll.u32 %s1620_s18, 4  ;;  %p1527_p0 = scmp.ne.s32.totalorder %s1903_s1, %s1526_s22  ;;  %s31_s19 = int_to_ptr.vmem [resolvable:$true] %s30_s19 }
   0x4   :  { %p1530_p1 = scmp.lt.u32.totalorder %s1526_s22, %s1903_s1 }
   0x6   :  { %p1532_p2 = pnand %p1530_p1, %p1527_p0 }
   0x8   :  { %1535 = shalt.err (!%p1532_p2)
}
   0x9   :  { %s1536_s27 = scalar_lea.vmem %s31_s19, 3072  ;;  %p1541_p4 = scmp.lt.s32.totalorder %s31_s19, %s31_s19 }
   0xa   :  { %p1537_p3 = scmp.ne.s32.totalorder %s31_s19, %s1536_s27  ;;  %p1542_p5 = scmp.lt.s32.totalorder %s1536_s27, %s1536_s27 }
   0xc   :  { %p1543_p6 = por %p1542_p5, %p1541_p4 }
   0xe   :  { %p1544_p7 = pnand %p1543_p6, %p1537_p3 }
  0x10   :  { %1547 = shalt.err (!%p1544_p7)
}
  0x11   :  { %s1621_s28 = smov 64   ;;  %s1622_s29 = smov 4  }
  0x12   :  { %36 = dma.hbm_to_vmem [thread:$0]  %s1903_s1, 3072, %s31_s19, [#allocation8], %s1621_s28, %s1621_s28, %s1622_s29  }
  0x13   :  { %s1623_s7 = smov [#allocation4]   ;;  %s1548_s11 = scalar_lea.hbm %s1902_s0, 512 }
  0x14   :  { %s18_s8 = sshll.u32 %s1623_s7, 4  ;;  %p1549_p8 = scmp.ne.s32.totalorder %s1902_s0, %s1548_s11  ;;  %s19_s8 = int_to_ptr.vmem [resolvable:$true] %s18_s8 }
  0x15   :  { %p1552_p9 = scmp.lt.u32.totalorder %s1548_s11, %s1902_s0 }
  0x17   :  { %p1554_p10 = pnand %p1552_p9, %p1549_p8 }
  0x19   :  { %1557 = shalt.err (!%p1554_p10)
}
  0x1a   :  { %s1558_s16 = scalar_lea.vmem %s19_s8, 512  ;;  %p1563_p12 = scmp.lt.s32.totalorder %s19_s8, %s19_s8 }
  0x1b   :  { %p1559_p11 = scmp.ne.s32.totalorder %s19_s8, %s1558_s16  ;;  %p1564_p13 = scmp.lt.s32.totalorder %s1558_s16, %s1558_s16 }
  0x1d   :  { %p1565_p0 = por %p1564_p13, %p1563_p12 }
  0x1f   :  { %p1566_p1 = pnand %p1565_p0, %p1559_p11 }
  0x21   :  { %1569 = shalt.err (!%p1566_p1)
}
  0x22   :  { %s1624_s1 = smov 128   ;;  %s1625_s17 = smov 8  }
  0x23   :  { %24 = dma.hbm_to_vmem [thread:$0]  %s1902_s0, 512, %s19_s8, [#allocation5], %s1624_s1, %s1624_s1, %s1625_s17  }
  0x24   :  { %s1626_s20 = smov [#allocation9]   ;;  %s1570_s24 = scalar_lea.hbm %s1905_s3, 3072 }
  0x25   :  { %s44_s21 = sshll.u32 %s1626_s20, 4  ;;  %p1571_p2 = scmp.ne.s32.totalorder %s1905_s3, %s1570_s24  ;;  %s45_s21 = int_to_ptr.vmem [resolvable:$true] %s44_s21 }
  0x26   :  { %p1574_p3 = scmp.lt.u32.totalorder %s1570_s24, %s1905_s3 }
  0x28   :  { %p1576_p4 = pnand %p1574_p3, %p1571_p2 }
  0x2a   :  { %1579 = shalt.err (!%p1576_p4)
}
  0x2b   :  { %s1580_s6 = scalar_lea.vmem %s45_s21, 3072  ;;  %p1585_p6 = scmp.lt.s32.totalorder %s45_s21, %s45_s21 }
  0x2c   :  { %p1581_p5 = scmp.ne.s32.totalorder %s45_s21, %s1580_s6  ;;  %p1586_p7 = scmp.lt.s32.totalorder %s1580_s6, %s1580_s6 }
  0x2e   :  { %p1587_p8 = por %p1586_p7, %p1585_p6 }
  0x30   :  { %p1588_p9 = pnand %p1587_p8, %p1581_p5 }
  0x32   :  { %1591 = shalt.err (!%p1588_p9)
}
  0x33   :  { %50 = dma.hbm_to_vmem [thread:$0]  %s1905_s3, 3072, %s45_s21, [#allocation8], %s1621_s28, %s1621_s28, %s1622_s29  }
  0x34   :  { %1614 = dma.done.wait [#allocation5], 512  }
  0x35   :  { %1615 = vsyncadd [#allocation5], 4294966784 }
  0x36   :  { %1616 = dma.done.wait [#allocation8], 6144  }
  0x37   :  { %1617 = vsyncadd [#allocation8], 4294961152  ;;  %v1474_v0 = vld [vmem:[#allocation7 + $0x40] sm:$0xff]   ;;  %v1475_v1 = vld [vmem:[#allocation7 + $0x48] sm:$0xff]   ;;  %vm63_vm0 = vcmask 1040384   ;;  %vm150_vm6 = vcmask 1043456  }
  0x38   :  { %1330 = vmatprep.subr.bf16.mxu0 %v1474_v0  ;;  %vm64_vm1 = vsmask.f32 256  ;;  %vm72_vm2 = vsmask.f32 7938  ;;  %v1476_v2 = vld [vmem:[#allocation7 + $0x50] sm:$0xff]   ;;  %v1477_v5 = vld [vmem:[#allocation7 + $0x58] sm:$0xff]  }
  0x39   :  { %1331 = vmatpush3.bf16.msra.mxu0 %v1474_v0  ;;  %vm1704_vm3 = vmand %vm63_vm0, %vm64_vm1  ;;  %vm108_vm5 = vsmask.f32 4368  ;;  %v66_v6 = vld [vmem:[#allocation2] sm:$0x1]  ;;  %v74_v7 = vld [vmem:[#allocation2 + $0x8] sm:$0x1] }
  0x3a   :  { %1332 = vmatprep.subr.bf16.mxu0 %v1475_v1  ;;  %vm1709_vm4 = vmand %vm63_vm0, %vm72_vm2  ;;  %v1713_v8 = vld [vmem:[#allocation4] sm:$0xff]  ;;  %v67_v9 = vsel %vm1704_vm3, 0, %v66_v6  ;;  %v1719_v11 = vld [vmem:[#allocation4 + $0x8] sm:$0xff]  ;;  %vm188_vm9 = vsmask.f32 3328  ;;  %vm476_vm12 = vcmask 1042432  }
  0x3b   :  { %v75_v10 = vsel %vm1709_vm4, 0, %v74_v7  ;;  %v1262_v12 = vpack.c.bf16 %v1713_v8, %v1713_v8  ;;  %v1478_v13 = vld [vmem:[#allocation7 + $0x60] sm:$0xff]   ;;  %68 = vst [vmem:[#allocation2] sm:$0x1] %v67_v9  ;;  %v1263_v14 = vpack.c.bf16 %v1719_v11, %v1719_v11  ;;  %v69_v15 = vld [vmem:[#allocation2 + $0xc] sm:$0x1]  ;;  %vm1739_vm7 = vmor %vm64_vm1, %vm108_vm5 }
  0x3c   :  { %76 = vst [vmem:[#allocation2 + $0x8] sm:$0x1] %v75_v10  ;;  %v77_v16 = vld [vmem:[#allocation2 + $0x14] sm:$0x1]  ;;  %v70_v19 = vsel %vm1704_vm3, 0, %v69_v15  ;;  %v1729_v21 = vld [vmem:[#allocation4 + $0x10] sm:$0xff]  ;;  %vm1745_vm8 = vmand %vm150_vm6, %vm72_vm2 }
  0x3d   :  { %1333 = vmatpush3.bf16.msra.mxu0 %v1475_v1  ;;  %v111_v17 = vshrl.u32 %v1262_v12, 16  ;;  %v114_v18 = vshll.u32 %v1262_v12, 16  ;;  %v78_v20 = vsel %vm1709_vm4, 0, %v77_v16  ;;  %v1731_v22 = vld [vmem:[#allocation4 + $0x18] sm:$0xff]  ;;  %v119_v23 = vshrl.u32 %v1263_v14, 16  ;;  %v1479_v37 = vld [vmem:[#allocation7 + $0x68] sm:$0xff]  }
  0x3e   :  { %1334 = vmatprep.subr.bf16.mxu0 %v1476_v2  ;;  %v122_v24 = vshll.u32 %v1263_v14, 16  ;;  %71 = vst [vmem:[#allocation2 + $0xc] sm:$0x1] %v70_v19  ;;  %79 = vst [vmem:[#allocation2 + $0x14] sm:$0x1] %v78_v20  ;;  %v1264_v25 = vpack.c.bf16 %v1729_v21, %v1729_v21  ;;  %v1265_v26 = vpack.c.bf16 %v1731_v22, %v1731_v22  ;;  %v1480_v53 = vld [vmem:[#allocation7 + $0x70] sm:$0xff]  }
  0x3f   :  { %v113_v27 = vrot.slane %v111_v17, 7  ;;  %v121_v29 = vrot.slane %v119_v23, 7  ;;  %v1481_v57 = vld [vmem:[#allocation7 + $0x78] sm:$0xff]   ;;  %vm189_vm10 = vsmask.f32 7440  ;;  %vm477_vm13 = vcmask 1046532  }
  0x40   :  { %v128_v30 = vshrl.u32 %v1264_v25, 16  ;;  %v131_v31 = vshll.u32 %v1264_v25, 16  ;;  %v136_v32 = vshrl.u32 %v1265_v26, 16  ;;  %v139_v36 = vshll.u32 %v1265_v26, 16  ;;  %vm1782_vm11 = vmor %vm188_vm9, %vm189_vm10  ;;  %v1824_v4 = vld [vmem:[#allocation9] sm:$0xff]   ;;  %s1627_s8 = smov [#allocation10]  }
  0x41   :  { %1335 = vmatpush3.bf16.msra.mxu0 %v1476_v2  ;;  %v116_v33 = vor.u32 %v114_v18, %v113_v27  ;;  %v117_v34 = vrot.slane %v113_v27, 4  ;;  %v124_v38 = vor.u32 %v122_v24, %v121_v29  ;;  %v126_v39 = vrot.slane %v121_v29, 4  ;;  %v1482_v2 = vld [vmem:[#allocation7] sm:$0xff]   ;;  %vm1791_vm14 = vmor %vm476_vm12, %vm477_vm13  ;;  %v1512_v24 = vld [vmem:[#allocation9 + $0x18] sm:$0xff]   ;;  %s1175_s9 = sshll.u32 %s1627_s8, 4  ;;  %s1176_s9 = int_to_ptr.vmem [resolvable:$true] %s1175_s9 }
  0x42   :  { %1336 = vmatprep.subr.bf16.mxu0 %v1477_v5  ;;  %v130_v40 = vrot.slane %v128_v30, 7  ;;  %v138_v41 = vrot.slane %v136_v32, 7  ;;  %v152_v42 = vld [vmem:[#allocation2] sm:$0xf]  ;;  %p1597_p11 = scmp.lt.s32.totalorder %s1176_s9, %s1176_s9 }
  0x43   :  { %v156_v43 = vld [vmem:[#allocation2 + $0x8] sm:$0x1]  ;;  %v125_v44 = vsel %vm1739_vm7, %v117_v34, %v124_v38  ;;  %v153_v45 = vsel %vm1745_vm8, %v116_v33, %v152_v42  ;;  %v1524_v42 = vld [vmem:[#allocation9 + $0xb0] sm:$0xff]  }
  0x44   :  { %v157_v46 = vsel %vm1704_vm3, %v126_v39, %v156_v43  ;;  %v133_v47 = vor.u32 %v131_v31, %v130_v40  ;;  %154 = vst [vmem:[#allocation2] sm:$0xf] %v153_v45  ;;  %155 = vst [vmem:[#allocation2 + $0x4] sm:$0xf] %v125_v44  ;;  %v134_v48 = vrot.slane %v130_v40, 4  ;;  %v141_v49 = vor.u32 %v139_v36, %v138_v41 }
  0x45   :  { %1337 = vmatpush3.bf16.msra.mxu0 %v1477_v5  ;;  %158 = vst [vmem:[#allocation2 + $0x8] sm:$0x1] %v157_v46  ;;  %v143_v50 = vrot.slane %v138_v41, 4  ;;  %v159_v51 = vld [vmem:[#allocation2 + $0xc] sm:$0xf] }
  0x46   :  { %1338 = vmatprep.subr.bf16.mxu0 %v1478_v13  ;;  %v163_v52 = vld [vmem:[#allocation2 + $0x14] sm:$0x1]  ;;  %v160_v54 = vsel %vm1745_vm8, %v133_v47, %v159_v51  ;;  %v142_v55 = vsel %vm1739_vm7, %v134_v48, %v141_v49  ;;  %v83_v47 = vld [vmem:[#allocation3 + $0xc] sm:$0x1]  ;;  %v1483_v49 = vld [vmem:[#allocation7 + $0x8] sm:$0xff]  }
  0x47   :  { %161 = vst [vmem:[#allocation2 + $0xc] sm:$0xf] %v160_v54  ;;  %v164_v56 = vsel %vm1704_vm3, %v143_v50, %v163_v52  ;;  %162 = vst [vmem:[#allocation2 + $0x10] sm:$0xf] %v142_v55  ;;  %v84_v50 = vsel %vm1704_vm3, 0, %v83_v47 }
  0x48   :  { %165 = vst [vmem:[#allocation2 + $0x14] sm:$0x1] %v164_v56  ;;  %85 = vst [vmem:[#allocation3 + $0xc] sm:$0x1] %v84_v50 }
  0x49   :  { %1339 = vmatpush3.bf16.msra.mxu0 %v1478_v13 }
  0x4a   :  { %1340 = vmatprep.subr.bf16.mxu0 %v1479_v37 }
  0x4b   :  { %v1761_v58 = vld [vmem:[#allocation2] sm:$0xf]  ;;  %v1763_v59 = vld [vmem:[#allocation2 + $0x4] sm:$0xf] }
  0x4c   :  { %v1765_v60 = vld [vmem:[#allocation2 + $0x8] sm:$0x1]  ;;  %v192_v61 = vshrl.u32 %v1761_v58, 16  ;;  %v195_v62 = vshll.u32 %v1761_v58, 16  ;;  %v201_v63 = vshll.u32 %v1763_v59, 16  ;;  %v205_v0 = vshrl.u32 %v1763_v59, 16 }
  0x4d   :  { %1341 = vmatpush3.bf16.msra.mxu0 %v1479_v37  ;;  %v211_v1 = vshll.u32 %v1765_v60, 16  ;;  %v1202_v52 = vcombine.low %v1761_v58, %v1763_v59  ;;  %v1486_v58 = vld [vmem:[#allocation7 + $0x20] sm:$0xff]  }
  0x4e   :  { %1342 = vmatprep.subr.bf16.mxu0 %v1480_v53  ;;  %v1772_v5 = vld [vmem:[#allocation2 + $0xc] sm:$0xf]  ;;  %v194_v6 = vrot.slane %v192_v61, 4  ;;  %v197_v7 = vrot.slane %v195_v62, 5  ;;  %v203_v9 = vrot.slane %v201_v63, 5  ;;  %v207_v10 = vrot.slane %v205_v0, 4 }
  0x4f   :  { %v1774_v12 = vld [vmem:[#allocation2 + $0x10] sm:$0xf]  ;;  %v213_v13 = vrot.slane %v211_v1, 5  ;;  %v187_v14 = vld [vmem:[#allocation2 + $0x14] sm:$0x1]  ;;  %v216_v15 = vshrl.u32 %v1772_v5, 16 }
  0x50   :  { %v219_v16 = vshll.u32 %v1772_v5, 16  ;;  %v225_v17 = vshll.u32 %v1774_v12, 16  ;;  %v198_v18 = vor.u32 %v197_v7, %v194_v6  ;;  %v208_v19 = vor.u32 %v207_v10, %v203_v9  ;;  %v471_v43 = vld [vmem:[#allocation2 + $0xc] sm:$0xe]  ;;  %v1487_v62 = vld [vmem:[#allocation7 + $0x28] sm:$0xff]   ;;  %v1488_v63 = vld [vmem:[#allocation7 + $0x30] sm:$0xff]  }
  0x51   :  { %1343 = vmatpush3.bf16.msra.mxu0 %v1480_v53  ;;  %v229_v20 = vshrl.u32 %v1774_v12, 16  ;;  %v235_v23 = vshll.u32 %v187_v14, 16  ;;  %v218_v25 = vrot.slane %v216_v15, 4  ;;  %v491_v34 = vrot.slane %v187_v14, 5  ;;  %v1485_v61 = vld [vmem:[#allocation7 + $0x18] sm:$0xff]   ;;  %v1491_v10 = vld [vmem:[#allocation7 + $0x80] sm:$0xff]  }
  0x52   :  { %1344 = vmatprep.subr.bf16.mxu0 %v1481_v57  ;;  %v221_v26 = vrot.slane %v219_v16, 5  ;;  %v227_v27 = vrot.slane %v225_v17, 5  ;;  %v199_v29 = vrot.slane %v198_v18, 4  ;;  %v209_v30 = vrot.slane %v208_v19, 4  ;;  %v470_v1 = vld [vmem:[#allocation2] sm:$0xe] }
  0x53   :  { %v231_v31 = vrot.slane %v229_v20, 4  ;;  %v237_v33 = vrot.slane %v235_v23, 5  ;;  %v488_v39 = vrot.slane %v1774_v12, 5  ;;  %v1213_v45 = vrot.slane %v471_v43, 9  ;;  %v1489_v6 = vld [vmem:[#allocation7 + $0x38] sm:$0xff]   ;;  %v1494_v16 = vld [vmem:[#allocation7 + $0x90] sm:$0xff]  }
  0x54   :  { %v222_v32 = vor.u32 %v221_v26, %v218_v25  ;;  %v204_v36 = vsel %vm1782_vm11, %v199_v29, %v203_v9  ;;  %v214_v37 = vsel %vm1782_vm11, %v209_v30, %v213_v13  ;;  %v481_v0 = vrot.slane %v1763_v59, 5  ;;  %v1495_v17 = vld [vmem:[#allocation7 + $0x98] sm:$0xff]   ;;  %v1496_v18 = vld [vmem:[#allocation7 + $0xa0] sm:$0xff]   ;;  %v1497_v19 = vld [vmem:[#allocation7 + $0xa8] sm:$0xff]  }
  0x55   :  { %1345 = vmatpush3.bf16.msra.mxu0 %v1481_v57  ;;  %v232_v38 = vor.u32 %v231_v31, %v227_v27  ;;  %v1192_v40 = vcombine.low %v204_v36, %v214_v37  ;;  %v490_v46 = vrot.slane %v488_v39, 4  ;;  %v1805_v53 = vsel %vm1791_vm14, %v1213_v45, %v488_v39  ;;  %v1484_v57 = vld [vmem:[#allocation7 + $0x10] sm:$0xff]   ;;  %v1500_v20 = vld [vmem:[#allocation9 + $0x40] sm:$0xff]   ;;  %v80_v23 = vld [vmem:[#allocation3] sm:$0x1] }
  0x56   :  { %1350 = vmatprep.subr.bf16.mxu0 %v1482_v2  ;;  %v223_v41 = vrot.slane %v222_v32, 4  ;;  %v1212_v7 = vrot.slane %v470_v1, 9  ;;  %v483_v9 = vrot.slane %v481_v0, 4  ;;  %v1203_v59 = vcombine.low %v1772_v5, %v1774_v12  ;;  %v1498_v5 = vld [vmem:[#allocation7 + $0xb0] sm:$0xff]   ;;  %v1499_v12 = vld [vmem:[#allocation7 + $0xb8] sm:$0xff]   ;;  %1390 = vmatprep.subr.bf16.mxu1 %v1500_v20  ;;  %v1501_v30 = vld [vmem:[#allocation9 + $0x48] sm:$0xff]  }
  0x57   :  { %v233_v44 = vrot.slane %v232_v38, 4  ;;  %1346 = vmatprep.mubr.bf16.mxu0 %v1192_v40  ;;  %v492_v54 = vsel %vm1791_vm14, %v490_v46, %v491_v34  ;;  %v81_v25 = vsel %vm1704_vm3, 0, %v80_v23  ;;  %v89_v26 = vld [vmem:[#allocation3 + $0x14] sm:$0x1]  ;;  %1391 = vmatpush3.bf16.msra.mxu1 %v1500_v20  ;;  %v86_v29 = vld [vmem:[#allocation3 + $0x8] sm:$0x1] }
  0x58   :  { %v228_v48 = vsel %vm1782_vm11, %v223_v41, %v227_v27  ;;  %v1215_v56 = vcombine.low %v1805_v53, %v492_v54  ;;  %v482_v13 = vsel %vm1791_vm14, %v1212_v7, %v481_v0  ;;  %82 = vst [vmem:[#allocation3] sm:$0x1] %v81_v25  ;;  %v90_v27 = vsel %vm1709_vm4, 0, %v89_v26  ;;  %1392 = vmatprep.subr.bf16.mxu1 %v1501_v30  ;;  %v1502_v32 = vld [vmem:[#allocation9 + $0x50] sm:$0xff]   ;;  %v1504_v34 = vld [vmem:[#allocation9 + $0x60] sm:$0xff]   ;;  %v1505_v36 = vld [vmem:[#allocation9 + $0x68] sm:$0xff]  }
  0x59   :  { %v238_v51 = vsel %vm1782_vm11, %v233_v44, %v237_v33  ;;  %91 = vst [vmem:[#allocation3 + $0x14] sm:$0x1] %v90_v27  ;;  %v87_v31 = vsel %vm1709_vm4, 0, %v86_v29  ;;  %v1503_v33 = vld [vmem:[#allocation9 + $0x58] sm:$0xff]   ;;  %v1506_v37 = vld [vmem:[#allocation9 + $0x70] sm:$0xff]  }
  0x5a   :  { %v1193_v55 = vcombine.low %v228_v48, %v238_v51  ;;  %88 = vst [vmem:[#allocation3 + $0x8] sm:$0x1] %v87_v31  ;;  %v1507_v38 = vld [vmem:[#allocation9 + $0x78] sm:$0xff]   ;;  %v1224_v39 = vld [vmem:[%s1904_s2] ss:$0 sm:$0xff] }
  0x5b   :  { %1393 = vmatpush3.bf16.msra.mxu1 %v1501_v30  ;;  %v693_v0 = vld [vmem:[#allocation3 + $0xc] sm:$0xf] }
  0x5c   :  { %1347 = vmatmul.mubr.bf16.vlgmr.msra.gmra.mrb[0].mxu0 %v1193_v55  ;;  %1394 = vmatprep.subr.bf16.mxu1 %v1502_v32 }
  0x5d   :  { %1351 = vmatpush3.bf16.msra.mxu0 %v1482_v2  ;;  %1366 = vmatprep.mubr.bf16.mxu0 %v1202_v52  ;;  %v484_v2 = vrot.slane %v1765_v60, 5  ;;  %v1493_v60 = vld [vmem:[#allocation7 + $0x88] sm:$0xff]  }
  0x5e   :  { %1352 = vmatprep.subr.bf16.mxu0 %v1483_v49 }
  0x5f   :  { %v485_v14 = vsel %vm1791_vm14, %v483_v9, %v484_v2  ;;  %1395 = vmatpush3.bf16.msra.mxu1 %v1502_v32  ;;  %v686_v9 = vld [vmem:[#allocation3] sm:$0xf] }
  0x60   :  { %v1214_v15 = vcombine.low %v482_v13, %v485_v14  ;;  %1396 = vmatprep.subr.bf16.mxu1 %v1503_v33 }
  0x61   :  { %1353 = vmatpush3.bf16.msra.mxu0 %v1483_v49 }
  0x62   :  { %1354 = vmatprep.subr.bf16.mxu0 %v1484_v57 }
  0x63   :  { %1397 = vmatpush3.bf16.msra.mxu1 %v1503_v33 }
  0x64   :  { %1398 = vmatprep.subr.bf16.mxu1 %v1504_v34 }
  0x65   :  { %1355 = vmatpush3.bf16.msra.mxu0 %v1484_v57 }
  0x66   :  { %1356 = vmatprep.subr.bf16.mxu0 %v1485_v61 }
  0x67   :  { %1399 = vmatpush3.bf16.msra.mxu1 %v1504_v34 }
  0x68   :  { %1400 = vmatprep.subr.bf16.mxu1 %v1505_v36 }
  0x69   :  { %1357 = vmatpush3.bf16.msra.mxu0 %v1485_v61 }
  0x6a   :  { %1358 = vmatprep.subr.bf16.mxu0 %v1486_v58 }
  0x6b   :  { %1401 = vmatpush3.bf16.msra.mxu1 %v1505_v36 }
  0x6c   :  { %1402 = vmatprep.subr.bf16.mxu1 %v1506_v37 }
  0x6d   :  { %1359 = vmatpush3.bf16.msra.mxu0 %v1486_v58 }
  0x6e   :  { %1360 = vmatprep.subr.bf16.mxu0 %v1487_v62 }
  0x6f   :  { %1403 = vmatpush3.bf16.msra.mxu1 %v1506_v37 }
  0x70   :  { %1404 = vmatprep.subr.bf16.mxu1 %v1507_v38 }
  0x71   :  { %1361 = vmatpush3.bf16.msra.mxu0 %v1487_v62 }
  0x72   :  { %1362 = vmatprep.subr.bf16.mxu0 %v1488_v63 }
  0x73   :  { %1405 = vmatpush3.bf16.msra.mxu1 %v1507_v38 }
  0x74   :  { %1410 = vmatprep.subr.bf16.mxu1 %v1824_v4 }
  0x75   :  { %1363 = vmatpush3.bf16.msra.mxu0 %v1488_v63 }
  0x76   :  { %1364 = vmatprep.subr.bf16.mxu0 %v1489_v6 }
  0x79   :  { %1365 = vmatpush3.bf16.msra.mxu0 %v1489_v6 }
  0x7a   :  { %1370 = vmatprep.subr.bf16.mxu0 %v1491_v10 }
  0x7c   :  { %1367 = vmatmul.mubr.bf16.vlgmr.msra.gmra.mrb[0].mxu0 %v1203_v59  ;;  %v697_v59 = vld [vmem:[#allocation3 + $0x14] sm:$0x1] }
  0x7d   :  { %1371 = vmatpush3.bf16.msra.mxu0 %v1491_v10  ;;  %1386 = vmatprep.mubr.bf16.mxu0 %v1214_v15 }
  0x7e   :  { %1372 = vmatprep.subr.bf16.mxu0 %v1493_v60 }
  0x81   :  { %1373 = vmatpush3.bf16.msra.mxu0 %v1493_v60 }
  0x82   :  { %1374 = vmatprep.subr.bf16.mxu0 %v1494_v16 }
  0x85   :  { %1375 = vmatpush3.bf16.msra.mxu0 %v1494_v16 }
  0x86   :  { %1376 = vmatprep.subr.bf16.mxu0 %v1495_v17 }
  0x89   :  { %1377 = vmatpush3.bf16.msra.mxu0 %v1495_v17 }
  0x8a   :  { %1378 = vmatprep.subr.bf16.mxu0 %v1496_v18 }
  0x8d   :  { %1379 = vmatpush3.bf16.msra.mxu0 %v1496_v18 }
  0x8e   :  { %1380 = vmatprep.subr.bf16.mxu0 %v1497_v19 }
  0x91   :  { %1381 = vmatpush3.bf16.msra.mxu0 %v1497_v19 }
  0x92   :  { %1382 = vmatprep.subr.bf16.mxu0 %v1498_v5 }
  0x95   :  { %1383 = vmatpush3.bf16.msra.mxu0 %v1498_v5  ;;  %v690_v5 = vld [vmem:[#allocation3 + $0x8] sm:$0x1] }
  0x96   :  { %1384 = vmatprep.subr.bf16.mxu0 %v1499_v12 }
  0x99   :  { %1385 = vmatpush3.bf16.msra.mxu0 %v1499_v12 }
  0x9c   :  { %1387 = vmatmul.mubr.bf16.vlgmr.msra.gmra.mrb[0].mxu0 %v1215_v56 }
 0x16f   :  { %v1388_v40 = vpop.f32.mrb[0].mxu0 }
 0x170   :  { %v628_v41 = vadd.f32 %v1388_v40, %v1224_v39  ;;  %v600_v43 = vpop.f32.mrb[1].mxu0 }
 0x171   :  { %v626_v44 = vadd.f32 %v1224_v39, %v600_v43  ;;  %v1389_v45 = vpop.f32.mrb[2].mxu0 }
 0x172   :  { %v632_v46 = vmax.f32 %v628_v41, 0.0  ;;  %v629_v47 = vadd.f32 %v1389_v45, %v1224_v39  ;;  %v603_v48 = vpop.f32.mrb[3].mxu0 }
 0x173   :  { %v630_v49 = vmax.f32 %v626_v44, 0.0  ;;  %v627_v50 = vadd.f32 %v1224_v39, %v603_v48 }
 0x174   :  { %v1268_v51 = vpack.c.bf16 %v632_v46, %v632_v46  ;;  %v633_v52 = vmax.f32 %v629_v47, 0.0 }
 0x175   :  { %v1266_v53 = vpack.c.bf16 %v630_v49, %v630_v49  ;;  %v631_v54 = vmax.f32 %v627_v50, 0.0 }
 0x176   :  { %v664_v55 = vshrl.u32 %v1268_v51, 16  ;;  %v1269_v56 = vpack.c.bf16 %v633_v52, %v633_v52  ;;  %v667_v62 = vshll.u32 %v1268_v51, 16 }
 0x177   :  { %v647_v57 = vshrl.u32 %v1266_v53, 16  ;;  %v1267_v61 = vpack.c.bf16 %v631_v54, %v631_v54  ;;  %v650_v2 = vshll.u32 %v1266_v53, 16 }
 0x178   :  { %v666_v58 = vrot.slane %v664_v55, 7  ;;  %v672_v63 = vshrl.u32 %v1269_v56, 16  ;;  %v675_v13 = vshll.u32 %v1269_v56, 16 }
 0x179   :  { %v649_v1 = vrot.slane %v647_v57, 7  ;;  %v655_v6 = vshrl.u32 %v1267_v61, 16  ;;  %v658_v60 = vshll.u32 %v1267_v61, 16 }
 0x17a   :  { %v669_v7 = vor.u32 %v667_v62, %v666_v58  ;;  %v674_v10 = vrot.slane %v672_v63, 7  ;;  %v670_v16 = vrot.slane %v666_v58, 4 }
 0x17b   :  { %v652_v14 = vor.u32 %v650_v2, %v649_v1  ;;  %v657_v15 = vrot.slane %v655_v6, 7  ;;  %v653_v12 = vrot.slane %v649_v1, 4 }
 0x17c   :  { %v694_v17 = vsel %vm1745_vm8, %v669_v7, %v693_v0  ;;  %v677_v18 = vor.u32 %v675_v13, %v674_v10  ;;  %v679_v19 = vrot.slane %v674_v10, 4 }
 0x17d   :  { %695 = vst [vmem:[#allocation3 + $0xc] sm:$0xf] %v694_v17  ;;  %v687_v20 = vsel %vm1745_vm8, %v652_v14, %v686_v9  ;;  %v660_v23 = vor.u32 %v658_v60, %v657_v15  ;;  %v662_v25 = vrot.slane %v657_v15, 4  ;;  %v1510_v17 = vld [vmem:[#allocation9 + $0x8] sm:$0xff]  }
 0x17e   :  { %688 = vst [vmem:[#allocation3] sm:$0xf] %v687_v20  ;;  %v678_v26 = vsel %vm1739_vm7, %v670_v16, %v677_v18  ;;  %v698_v27 = vsel %vm1704_vm3, %v679_v19, %v697_v59  ;;  %v1511_v20 = vld [vmem:[#allocation9 + $0x10] sm:$0xff]  }
 0x17f   :  { %696 = vst [vmem:[#allocation3 + $0x10] sm:$0xf] %v678_v26  ;;  %699 = vst [vmem:[#allocation3 + $0x14] sm:$0x1] %v698_v27  ;;  %v661_v29 = vsel %vm1739_vm7, %v653_v12, %v660_v23  ;;  %v691_v30 = vsel %vm1704_vm3, %v662_v25, %v690_v5  ;;  %v1513_v23 = vld [vmem:[#allocation9 + $0x20] sm:$0xff]   ;;  %v1514_v25 = vld [vmem:[#allocation9 + $0x28] sm:$0xff]  }
 0x180   :  { %689 = vst [vmem:[#allocation3 + $0x4] sm:$0xf] %v661_v29  ;;  %692 = vst [vmem:[#allocation3 + $0x8] sm:$0x1] %v691_v30  ;;  %v1515_v26 = vld [vmem:[#allocation9 + $0x30] sm:$0xff]  }
 0x184   :  { %v1842_v35 = vld [vmem:[#allocation3 + $0xc] sm:$0xf] }
 0x185   :  { %v700_v31 = vld [vmem:[#allocation3] sm:$0xf]  ;;  %v747_v32 = vshrl.u32 %v1842_v35, 16  ;;  %v750_v33 = vshll.u32 %v1842_v35, 16  ;;  %v1002_v0 = vld [vmem:[#allocation3 + $0xc] sm:$0xe] }
 0x186   :  { %v723_v34 = vshrl.u32 %v700_v31, 16  ;;  %v726_v36 = vshll.u32 %v700_v31, 16  ;;  %v1846_v37 = vld [vmem:[#allocation3 + $0x10] sm:$0xf]  ;;  %v721_v46 = vld [vmem:[#allocation3 + $0x14] sm:$0x1] }
 0x187   :  { %v1848_v38 = vld [vmem:[#allocation3 + $0x4] sm:$0xf]  ;;  %v1850_v28 = vld [vmem:[#allocation3 + $0x8] sm:$0x1]  ;;  %v749_v39 = vrot.slane %v747_v32, 4  ;;  %v752_v3 = vrot.slane %v750_v33, 5 }
 0x188   :  { %v725_v40 = vrot.slane %v723_v34, 4  ;;  %v728_v41 = vrot.slane %v726_v36, 5  ;;  %v732_v43 = vshll.u32 %v1848_v38, 16  ;;  %v736_v44 = vshrl.u32 %v1848_v38, 16  ;;  %v1001_v30 = vld [vmem:[#allocation3] sm:$0xe] }
 0x189   :  { %v742_v45 = vshll.u32 %v1850_v28, 16  ;;  %v753_v47 = vor.u32 %v752_v3, %v749_v39  ;;  %v756_v48 = vshll.u32 %v1846_v37, 16  ;;  %v760_v52 = vshrl.u32 %v1846_v37, 16  ;;  %v1518_v32 = vld [vmem:[#allocation9 + $0x80] sm:$0xff]   ;;  %v1519_v39 = vld [vmem:[#allocation9 + $0x88] sm:$0xff]  }
 0x18a   :  { %v729_v49 = vor.u32 %v728_v41, %v725_v40  ;;  %v734_v50 = vrot.slane %v732_v43, 5  ;;  %v738_v51 = vrot.slane %v736_v44, 4  ;;  %v766_v57 = vshll.u32 %v721_v46, 16  ;;  %v1521_v40 = vld [vmem:[#allocation9 + $0x98] sm:$0xff]   ;;  %v1522_v41 = vld [vmem:[#allocation9 + $0xa0] sm:$0xff]  }
 0x18b   :  { %v758_v53 = vrot.slane %v756_v48, 5  ;;  %v762_v56 = vrot.slane %v760_v52, 4  ;;  %v744_v58 = vrot.slane %v742_v45, 5  ;;  %v754_v62 = vrot.slane %v753_v47, 4  ;;  %v1261_v43 = vld [vmem:[%s1906_s4] ss:$0 sm:$0xff] }
 0x18c   :  { %v730_v54 = vrot.slane %v729_v49, 4  ;;  %v739_v55 = vor.u32 %v738_v51, %v734_v50  ;;  %v1016_v1 = vrot.slane %v1846_v37, 5  ;;  %v768_v9 = vrot.slane %v766_v57, 5  ;;  %s1592_s4 = scalar_lea.vmem %s1176_s9, 512 }
 0x18d   :  { %v763_v63 = vor.u32 %v762_v56, %v758_v53  ;;  %v1019_v13 = vrot.slane %v721_v46, 5  ;;  %v1250_v14 = vrot.slane %v1002_v0, 9  ;;  %v759_v15 = vsel %vm1782_vm11, %v754_v62, %v758_v53  ;;  %p1593_p10 = scmp.ne.s32.totalorder %s1176_s9, %s1592_s4  ;;  %p1598_p12 = scmp.lt.s32.totalorder %s1592_s4, %s1592_s4 }
 0x18e   :  { %v740_v61 = vrot.slane %v739_v55, 4  ;;  %v735_v2 = vsel %vm1782_vm11, %v730_v54, %v734_v50  ;;  %v1018_v59 = vrot.slane %v1016_v1, 4  ;;  %v1239_v5 = vcombine.low %v700_v31, %v1848_v38 }
 0x18f   :  { %v764_v7 = vrot.slane %v763_v63, 4  ;;  %v1017_v18 = vsel %vm1791_vm14, %v1250_v14, %v1016_v1  ;;  %v1009_v27 = vrot.slane %v1848_v38, 5  ;;  %v1012_v31 = vrot.slane %v1850_v28, 5  ;;  %v1520_v28 = vld [vmem:[#allocation9 + $0x90] sm:$0xff]   ;;  %p1599_p13 = por %p1598_p12, %p1597_p11 }
 0x190   :  { %v745_v6 = vsel %vm1782_vm11, %v740_v61, %v744_v58  ;;  %v1020_v19 = vsel %vm1791_vm14, %v1018_v59, %v1019_v13  ;;  %v1249_v33 = vrot.slane %v1001_v30, 9  ;;  %v1240_v36 = vcombine.low %v1842_v35, %v1846_v37  ;;  %v1523_v35 = vld [vmem:[#allocation9 + $0xa8] sm:$0xff]   ;;  %v1525_v37 = vld [vmem:[#allocation9 + $0xb8] sm:$0xff]  }
 0x191   :  { %v1229_v10 = vcombine.low %v735_v2, %v745_v6  ;;  %v769_v60 = vsel %vm1782_vm11, %v764_v7, %v768_v9  ;;  %v1252_v12 = vcombine.low %v1017_v18, %v1020_v19  ;;  %v1011_v29 = vrot.slane %v1009_v27, 4  ;;  %p1600_p0 = pnand %p1599_p13, %p1593_p10 }
 0x192   :  { %v1230_v16 = vcombine.low %v759_v15, %v769_v60  ;;  %v1010_v38 = vsel %vm1791_vm14, %v1249_v33, %v1009_v27 }
 0x193   :  { %1406 = vmatprep.mubr.bf16.mxu1 %v1229_v10  ;;  %v1013_v34 = vsel %vm1791_vm14, %v1011_v29, %v1012_v31 }
 0x194   :  { %1407 = vmatmul.mubr.bf16.vlgmr.msra.gmra.mrb[0].mxu1 %v1230_v16  ;;  %v1251_v3 = vcombine.low %v1010_v38, %v1013_v34 }
 0x195   :  { %1411 = vmatpush3.bf16.msra.mxu1 %v1824_v4  ;;  %1426 = vmatprep.mubr.bf16.mxu1 %v1239_v5  ;;  %v1516_v4 = vld [vmem:[#allocation9 + $0x38] sm:$0xff]  }
 0x196   :  { %1412 = vmatprep.subr.bf16.mxu1 %v1510_v17 }
 0x199   :  { %1413 = vmatpush3.bf16.msra.mxu1 %v1510_v17 }
 0x19a   :  { %1414 = vmatprep.subr.bf16.mxu1 %v1511_v20 }
 0x19d   :  { %1415 = vmatpush3.bf16.msra.mxu1 %v1511_v20 }
 0x19e   :  { %1416 = vmatprep.subr.bf16.mxu1 %v1512_v24 }
 0x1a1   :  { %1417 = vmatpush3.bf16.msra.mxu1 %v1512_v24 }
 0x1a2   :  { %1418 = vmatprep.subr.bf16.mxu1 %v1513_v23 }
 0x1a5   :  { %1419 = vmatpush3.bf16.msra.mxu1 %v1513_v23 }
 0x1a6   :  { %1420 = vmatprep.subr.bf16.mxu1 %v1514_v25 }
 0x1a9   :  { %1421 = vmatpush3.bf16.msra.mxu1 %v1514_v25 }
 0x1aa   :  { %1422 = vmatprep.subr.bf16.mxu1 %v1515_v26 }
 0x1ad   :  { %1423 = vmatpush3.bf16.msra.mxu1 %v1515_v26 }
 0x1ae   :  { %1424 = vmatprep.subr.bf16.mxu1 %v1516_v4 }
 0x1b1   :  { %1425 = vmatpush3.bf16.msra.mxu1 %v1516_v4 }
 0x1b2   :  { %1430 = vmatprep.subr.bf16.mxu1 %v1518_v32 }
 0x1b4   :  { %1427 = vmatmul.mubr.bf16.vlgmr.msra.gmra.mrb[0].mxu1 %v1240_v36 }
 0x1b5   :  { %1431 = vmatpush3.bf16.msra.mxu1 %v1518_v32  ;;  %1446 = vmatprep.mubr.bf16.mxu1 %v1251_v3 }
 0x1b6   :  { %1432 = vmatprep.subr.bf16.mxu1 %v1519_v39 }
 0x1b9   :  { %1433 = vmatpush3.bf16.msra.mxu1 %v1519_v39 }
 0x1ba   :  { %1434 = vmatprep.subr.bf16.mxu1 %v1520_v28 }
 0x1bd   :  { %1435 = vmatpush3.bf16.msra.mxu1 %v1520_v28 }
 0x1be   :  { %1436 = vmatprep.subr.bf16.mxu1 %v1521_v40 }
 0x1c1   :  { %1437 = vmatpush3.bf16.msra.mxu1 %v1521_v40 }
 0x1c2   :  { %1438 = vmatprep.subr.bf16.mxu1 %v1522_v41 }
 0x1c5   :  { %1439 = vmatpush3.bf16.msra.mxu1 %v1522_v41 }
 0x1c6   :  { %1440 = vmatprep.subr.bf16.mxu1 %v1523_v35 }
 0x1c9   :  { %1441 = vmatpush3.bf16.msra.mxu1 %v1523_v35 }
 0x1ca   :  { %1442 = vmatprep.subr.bf16.mxu1 %v1524_v42 }
 0x1cd   :  { %1443 = vmatpush3.bf16.msra.mxu1 %v1524_v42 }
 0x1ce   :  { %1444 = vmatprep.subr.bf16.mxu1 %v1525_v37 }
 0x1d1   :  { %1445 = vmatpush3.bf16.msra.mxu1 %v1525_v37 }
 0x1d4   :  { %1447 = vmatmul.mubr.bf16.vlgmr.msra.gmra.mrb[0].mxu1 %v1252_v12 }
 0x2a7   :  { %v1448_v44 = vpop.f32.mrb[0].mxu1 }
 0x2a8   :  { %v1156_v45 = vadd.f32 %v1448_v44, %v1261_v43  ;;  %v1128_v46 = vpop.f32.mrb[1].mxu1 }
 0x2a9   :  { %v1154_v47 = vadd.f32 %v1261_v43, %v1128_v46  ;;  %v1449_v48 = vpop.f32.mrb[2].mxu1 }
 0x2aa   :  { %v1160_v49 = vadd.f32 %v1156_v45, %v1729_v21  ;;  %v1157_v50 = vadd.f32 %v1449_v48, %v1261_v43  ;;  %v1131_v51 = vpop.f32.mrb[3].mxu1 }
 0x2ab   :  { %v1158_v52 = vadd.f32 %v1154_v47, %v1713_v8  ;;  %v1155_v53 = vadd.f32 %v1261_v43, %v1131_v51 }
 0x2ac   :  { %v1164_v54 = vmax.f32 %v1160_v49, 0.0  ;;  %v1161_v55 = vadd.f32 %v1157_v50, %v1731_v22 }
 0x2ad   :  { %v1162_v56 = vmax.f32 %v1158_v52, 0.0  ;;  %v1159_v57 = vadd.f32 %v1155_v53, %v1719_v11 }
 0x2ae   :  { %1168 = vst [vmem:[#allocation10 + $0x10] sm:$0xff] %v1164_v54  ;;  %v1165_v61 = vmax.f32 %v1161_v55, 0.0 }
 0x2af   :  { %1166 = vst [vmem:[#allocation10] sm:$0xff] %v1162_v56  ;;  %v1163_v58 = vmax.f32 %v1159_v57, 0.0 }
 0x2b0   :  { %1169 = vst [vmem:[#allocation10 + $0x18] sm:$0xff] %v1165_v61 }
 0x2b1   :  { %1167 = vst [vmem:[#allocation10 + $0x8] sm:$0xff] %v1163_v58 }
 0x2b2   :  { %1603 = shalt.err (!%p1600_p0)
}
 0x2b3   :  { %s1604_s12 = scalar_lea.hbm %s1907_s5, 512 }
 0x2b4   :  { %p1605_p1 = scmp.ne.s32.totalorder %s1907_s5, %s1604_s12  ;;  %p1608_p2 = scmp.lt.u32.totalorder %s1604_s12, %s1907_s5 }
 0x2b6   :  { %p1610_p3 = pnand %p1608_p2, %p1605_p1 }
 0x2b8   :  { %1613 = shalt.err (!%p1610_p3)
}
 0x2b9   :  { %1181 = dma.vmem_to_hbm [thread:$0]  %s1176_s9, 512, %s1907_s5, [#allocation6], %s1624_s1, %s1624_s1, %s1625_s17  }
 0x2ba   :  { %1618 = dma.done.wait [#allocation6], 512  }
 0x2bb   :  { %1619 = vsyncadd [#allocation6], 4294966784 }
 0x2bc   :  { %1185 = vsyncpa [#allocation5], 1 }
 0x2bd   :  { %1186 = vsyncpa [#allocation8], 1 }
 0x2be   :  { %1187 = vsyncpa [#allocation6], 1 }

</bundles_post_ra>
